<compile_context>
chip_gen: v5e
topology: v5e:2x2
jax: 0.10.0
libtpu: 0.0.40
codegen_flags: <defaults>
</compile_context>

<pallas_src>
import functools

import jax
import jax.numpy as jnp
from jax.experimental import pallas as pl
from jax.experimental.pallas import tpu as pltpu


def _layernorm_kernel(x_ref, a_ref, b_ref, o_ref, *, eps, c):
    # x_ref: (C, tile_s)  -- C on sublanes, spatial on lanes (lane-dense)
    # a_ref, b_ref: (C, 1), already float32 (cast hoisted to the wrapper)
    x = x_ref[...].astype(jnp.float32)
    a = a_ref[...]
    b = b_ref[...]

    mean = jnp.mean(x, axis=0, keepdims=True)            # (1, tile_s)
    diff = x - mean
    # torch.std default: unbiased (divide by C-1)
    var = jnp.sum(diff * diff, axis=0, keepdims=True) / jnp.float32(c - 1)
    std = jnp.sqrt(var)
    inv = pl.reciprocal(std + jnp.float32(eps), approx=False)  # exact (EUP + refine)

    o_ref[...] = (a * diff * inv + b).astype(o_ref.dtype)


def _ceil_div(a, b):
    return -(-a // b)


def _sublane_pad(c, itemsize):
    """Channel count padded to the sublane packing granularity for this dtype."""
    pack = max(1, 4 // itemsize)   # f32 -> 1, bf16 -> 2, int8 -> 4
    gran = 8 * pack                # f32 -> 8, bf16 -> 16, int8 -> 32
    return _ceil_div(c, gran) * gran


def _pick_spatial_tile(hw, c, itemsize, batch, max_block_bytes, vmem_budget_bytes,
                       min_tile=512, min_total_steps=4):
    """Pick a lane-dense spatial tile.

    Returns (tile_s, per_col_vmem_bytes).  tile_s is a multiple of 128 (or the
    full spatial extent).  The budget accounts for the sublane-padded channel
    count and the in-kernel f32 temporaries, not just raw block bytes.
    """
    c_pad = _sublane_pad(c, itemsize)
    per_col_raw = c_pad * itemsize                 # one HBM block column
    # VMEM per spatial column: 2x input + 2x output double buffers (io dtype)
    # + ~3 f32 (C_pad, tile) temporaries (x upcast, diff, pre-cast result).
    per_col_vmem = c_pad * (4 * itemsize + 3 * 4)

    cols = min(max_block_bytes // max(1, per_col_raw),
               max(128, vmem_budget_bytes // per_col_vmem))
    tile = max(128, (cols // 128) * 128)
    if tile >= hw:
        tile = hw                                  # full extent always allowed

    # Ensure the grid has enough steps for pipeline overlap / both v7x cores,
    # but never shrink below min_tile lanes (DMA-chunk size / unmasked stores).
    total_steps = batch * _ceil_div(hw, tile)
    if total_steps < min_total_steps and hw > min_tile:
        spatial_steps = _ceil_div(min_total_steps, max(1, batch))
        t2 = _ceil_div(hw, spatial_steps)
        t2 = max(min_tile, _ceil_div(t2, 128) * 128)
        if t2 < hw:
            tile = t2

    return tile, per_col_vmem


def torch_layer_norm_pallas(x_nchw, a_2, b_2, eps=1e-6, max_block_bytes=8 << 20):
    """x_nchw: (B, C, H, W); a_2, b_2: (C,). Returns (B, C, H, W)."""
    B, C, H, W = x_nchw.shape
    if C < 2:
        # Unbiased std divides by C-1; torch would produce nan/inf here too.
        raise ValueError("TorchLayerNorm requires C >= 2 (unbiased std).")

    HW = H * W
    x3 = x_nchw.reshape(B, C, HW)      # free reshape: NCHW is row-major contiguous
    itemsize = jnp.dtype(x_nchw.dtype).itemsize

    tile_s, per_col_vmem = _pick_spatial_tile(
        HW, C, itemsize, B, max_block_bytes, vmem_budget_bytes=50 << 20)
    grid = (B, pl.cdiv(HW, tile_s))

    # Hoist the param cast/reshape out of the kernel (done once, not per step).
    a2 = a_2.astype(jnp.float32).reshape(C, 1)
    b2 = b_2.astype(jnp.float32).reshape(C, 1)

    # Scoped VMEM: enough for the real footprint, capped at ~56 MiB so it is
    # safe on v7x's 64 MiB physical VMEM (and trivially safe on v5e/v6e).
    vmem_limit = int(min(56 << 20,
                         max(32 << 20, per_col_vmem * tile_s + (4 << 20))))

    kernel = functools.partial(_layernorm_kernel, eps=eps, c=C)

    out3 = pl.pallas_call(
        kernel,
        out_shape=jax.ShapeDtypeStruct((B, C, HW), x_nchw.dtype),
        grid_spec=pltpu.PrefetchScalarGridSpec(
            num_scalar_prefetch=0,
            grid=grid,
            in_specs=[
                # (batch squeezed, all channels, lane-dense spatial tile)
                pl.BlockSpec((None, C, tile_s), lambda b, s: (b, 0, s)),
                pl.BlockSpec((C, 1), lambda b, s: (0, 0)),   # resident params
                pl.BlockSpec((C, 1), lambda b, s: (0, 0)),
            ],
            out_specs=pl.BlockSpec((None, C, tile_s), lambda b, s: (b, 0, s)),
        ),
        compiler_params=pltpu.CompilerParams(
            dimension_semantics=("parallel", "parallel"),
            vmem_limit_bytes=vmem_limit,
        ),
    )(x3, a2, b2)

    return out3.reshape(B, C, H, W)


def _reference(x_nchw, a_2, b_2, eps=1e-6):
    x = jnp.transpose(x_nchw, (0, 2, 3, 1)).astype(jnp.float32)
    mean = jnp.mean(x, axis=-1, keepdims=True)
    var = jnp.sum((x - mean) ** 2, axis=-1, keepdims=True) / (x.shape[-1] - 1)
    std = jnp.sqrt(var)
    res = a_2 * (x - mean) / (std + eps) + b_2
    return jnp.transpose(res, (0, 3, 1, 2)).astype(x_nchw.dtype)


if __name__ == "__main__":
    key = jax.random.PRNGKey(0)

    # Primary test: small NCHW input consistent with the module.
    B, C, H, W = 2, 4, 16, 16
    x = jax.random.normal(key, (B, C, H, W), dtype=jnp.float32)
    # Deterministic params matching nn.Parameter(torch.ones/zeros(in_shape)).
    a_2 = jnp.ones((C,), dtype=jnp.float32)
    b_2 = jnp.zeros((C,), dtype=jnp.float32)

    out = torch_layer_norm_pallas(x, a_2, b_2, eps=1e-6)
    out = jax.block_until_ready(out)
    ref = _reference(x, a_2, b_2, eps=1e-6)
    assert out.shape == (B, C, H, W)
    assert jnp.allclose(out, ref, atol=1e-5, rtol=1e-5)

    # Secondary test: spatial extent not divisible by the tile (exercises the
    # partial-block / masked-store path and non-trivial affine params).
    key2, key3, key4 = jax.random.split(key, 3)
    B2, C2, H2, W2 = 1, 8, 24, 24            # HW = 576 -> tile 512 + partial 64
    x2 = jax.random.normal(key2, (B2, C2, H2, W2), dtype=jnp.float32)
    a2p = jax.random.normal(key3, (C2,), dtype=jnp.float32)
    b2p = jax.random.normal(key4, (C2,), dtype=jnp.float32)
    out2 = jax.block_until_ready(torch_layer_norm_pallas(x2, a2p, b2p, eps=1e-6))
    ref2 = _reference(x2, a2p, b2p, eps=1e-6)
    assert jnp.allclose(out2, ref2, atol=1e-5, rtol=1e-5)

    print("KERNEL_OK")
</pallas_src>

<mosaic_0001>
module attributes {stable_mosaic.version = 11 : i64} {
  func.func @_layernorm_kernel(%arg0: i32, %arg1: i32, %arg2: memref<1x4x256xf32, #tpu.memory_space<vmem>>, %arg3: memref<4x1xf32, #tpu.memory_space<vmem>>, %arg4: memref<4x1xf32, #tpu.memory_space<vmem>>, %arg5: memref<1x4x256xf32, #tpu.memory_space<vmem>>) attributes {dimension_semantics = [#tpu.dimension_semantics<parallel>, #tpu.dimension_semantics<parallel>], iteration_bounds = array<i64: 2, 1>, scalar_prefetch = 0 : i64, scratch_operands = 0 : i64, tpu.core_type = #tpu.core_type<tc>, window_params = [{transform_indices = @transform_0, window_bounds = array<i64: 1, 4, 256>}, {pipeline_mode = #tpu.pipeline_mode<synchronous>, transform_indices = @transform_1, window_bounds = array<i64: 4, 1>}, {pipeline_mode = #tpu.pipeline_mode<synchronous>, transform_indices = @transform_2, window_bounds = array<i64: 4, 1>}, {transform_indices = @transform_3, window_bounds = array<i64: 1, 4, 256>}]} {
    %c0 = arith.constant 0 : index
    %c0_0 = arith.constant 0 : index
    %c0_1 = arith.constant 0 : index
    %0 = vector.load %arg2[%c0, %c0_0, %c0_1] : memref<1x4x256xf32, #tpu.memory_space<vmem>>, vector<1x4x256xf32>
    %1 = vector.shape_cast %0 : vector<1x4x256xf32> to vector<4x256xf32>
    %c0_2 = arith.constant 0 : index
    %c0_3 = arith.constant 0 : index
    %2 = vector.load %arg3[%c0_2, %c0_3] : memref<4x1xf32, #tpu.memory_space<vmem>>, vector<4x1xf32>
    %c0_4 = arith.constant 0 : index
    %c0_5 = arith.constant 0 : index
    %3 = vector.load %arg4[%c0_4, %c0_5] : memref<4x1xf32, #tpu.memory_space<vmem>>, vector<4x1xf32>
    %cst = arith.constant dense<0.000000e+00> : vector<256xf32>
    %4 = vector.multi_reduction <add>, %1, %cst [0] : vector<4x256xf32> to vector<256xf32>
    %5 = vector.shape_cast %4 : vector<256xf32> to vector<1x256xf32>
    %cst_6 = arith.constant 4.000000e+00 : f32
    %6 = vector.broadcast %cst_6 : f32 to vector<1x256xf32>
    %7 = arith.divf %5, %6 : vector<1x256xf32>
    %8 = vector.broadcast %7 : vector<1x256xf32> to vector<4x256xf32>
    %9 = arith.subf %1, %8 : vector<4x256xf32>
    %10 = arith.mulf %9, %9 : vector<4x256xf32>
    %cst_7 = arith.constant dense<0.000000e+00> : vector<256xf32>
    %11 = vector.multi_reduction <add>, %10, %cst_7 [0] : vector<4x256xf32> to vector<256xf32>
    %12 = vector.shape_cast %11 : vector<256xf32> to vector<1x256xf32>
    %cst_8 = arith.constant 3.000000e+00 : f32
    %13 = vector.broadcast %cst_8 : f32 to vector<1x256xf32>
    %14 = arith.divf %12, %13 : vector<1x256xf32>
    %15 = math.sqrt %14 : vector<1x256xf32>
    %cst_9 = arith.constant 9.99999997E-7 : f32
    %16 = vector.broadcast %cst_9 : f32 to vector<1x256xf32>
    %17 = arith.addf %15, %16 : vector<1x256xf32>
    %18 = tpu.reciprocal %17 : vector<1x256xf32> -> vector<1x256xf32>
    %19 = vector.broadcast %2 : vector<4x1xf32> to vector<4x256xf32>
    %20 = arith.mulf %19, %9 : vector<4x256xf32>
    %21 = vector.broadcast %18 : vector<1x256xf32> to vector<4x256xf32>
    %22 = arith.mulf %20, %21 : vector<4x256xf32>
    %23 = vector.broadcast %3 : vector<4x1xf32> to vector<4x256xf32>
    %24 = arith.addf %22, %23 : vector<4x256xf32>
    %c0_10 = arith.constant 0 : index
    %c0_11 = arith.constant 0 : index
    %c0_12 = arith.constant 0 : index
    %25 = vector.load %arg5[%c0_10, %c0_11, %c0_12] : memref<1x4x256xf32, #tpu.memory_space<vmem>>, vector<1x4x256xf32>
    %26 = vector.shape_cast %25 : vector<1x4x256xf32> to vector<4x256xf32>
    %27 = vector.shape_cast %24 : vector<4x256xf32> to vector<1x4x256xf32>
    tpu.vector_store %arg5[%c0_10, %c0_11, %c0_12], %27 {strides = array<i32>} : memref<1x4x256xf32, #tpu.memory_space<vmem>>, vector<1x4x256xf32>,
    return
  }
  func.func @transform_0(%arg0: i32, %arg1: i32) -> (i32, i32, i32) {
    %c0_i32 = arith.constant 0 : i32
    %c0_i32_0 = arith.constant 0 : i32
    return %arg0, %c0_i32, %arg1 : i32, i32, i32
  }
  func.func @transform_1(%arg0: i32, %arg1: i32) -> (i32, i32) {
    %c0_i32 = arith.constant 0 : i32
    %c0_i32_0 = arith.constant 0 : i32
    %c0_i32_1 = arith.constant 0 : i32
    return %c0_i32, %c0_i32_0 : i32, i32
  }
  func.func @transform_2(%arg0: i32, %arg1: i32) -> (i32, i32) {
    %c0_i32 = arith.constant 0 : i32
    %c0_i32_0 = arith.constant 0 : i32
    %c0_i32_1 = arith.constant 0 : i32
    return %c0_i32, %c0_i32_0 : i32, i32
  }
  func.func @transform_3(%arg0: i32, %arg1: i32) -> (i32, i32, i32) {
    %c0_i32 = arith.constant 0 : i32
    %c0_i32_0 = arith.constant 0 : i32
    return %arg0, %c0_i32, %arg1 : i32, i32, i32
  }
}

</mosaic_0001>

<bundles_post_ra>
// kernel: tpu_custom_call.1
= control target key start
LH: loop header
LB: loop body
LE: loop exit
PB: predicated region body
PF: predicated region fallthrough
CT: control target
= control target key end

     0   :  { %8 = vsyncpa [#allocation3], 0  ;;  %s837_s0 = inlined_call_operand.hbm [shape: f32[2,4,256], index: 0, kind: input, shape index: {}]   ;;  %s838_s1 = inlined_call_operand.vmem [shape: f32[4,1], index: 1, kind: input, shape index: {}]   ;;  %s839_s2 = inlined_call_operand.vmem [shape: f32[4,1], index: 2, kind: input, shape index: {}]   ;;  %s840_s3 = inlined_call_operand.hbm [shape: f32[2,4,256], index: 3, kind: output, shape index: {}]  }
   0x1   :  { %10 = vsyncpa [#allocation3 + $0x1], 0 }
   0x2   :  { %11 = vsyncpa [#allocation4], 0 }
   0x3   :  { %13 = vsyncpa [#allocation4 + $0x1], 0  ;;  %s695_s12 = smov 0   ;;  %s697_s13 = smov 0  }
   0x4   :  { %s699_s14 = smov 0   ;;  %s701_s15 = smov 0  }
   0x5   :  { %s703_s16 = smov 0   ;;  %s705_s17 = smov 0  }
   0x6 LB: > { %s463_s18 = sadd.s32 4294967295, %s670_s17   ;;  %s464_s19 = sadd.s32 4294967294, %s670_s17   ;;  %s670_s17 = sphi %s705_s17, %s19_s17   ;;  %s666_s16 = sphi %s703_s16, %s851_s16   ;;  %s662_s15 = sphi %s701_s15, %s850_s15   ;;  %s658_s14 = sphi %s699_s14, %s849_s14   ;;  %s654_s13 = sphi %s697_s13, %s848_s13   ;;  %s650_s12 = sphi %s695_s12, %s847_s12  }
   0x7   : > { %s31_s20 = sadd.s32 1, %s666_s16  ;;  %s40_s21 = sadd.s32 1, %s658_s14 }
   0x8   : > { %p33_p0 = scmp.ge.s32.totalorder %s31_s20, 2  ;;  %p47_p1 = scmp.ne.s32.totalorder %s658_s14, %s654_s13 }
   0x9   : > { %p48_p2 = scmp.eq.s32.totalorder %s670_s17, 0  ;;  %p53_p3 = scmp.ne.s32.totalorder %s654_s13, %s650_s12 }
   0xa   : > { %s853_s20 = smov (%p33_p0, %s31_s20), 0  ;;  %p54_p5 = scmp.eq.s32.totalorder %s463_s18, 0 }
   0xb   : > { %p736_p4 = por %p48_p2, %p47_p1  ;;  %s35_s23 = ssub.s32 %s666_s16, %s853_s20 }
   0xc   : > { %p121_p6 = scmp.eq.s32.totalorder %s463_s18, 1  ;;  %p38_p7 = scmp.eq.s32.totalorder %s35_s23, 0 }
   0xd   : > { %p742_p8 = por %p54_p5, %p53_p3  ;;  %p127_p10 = scmp.eq.s32.totalorder %s464_s19, 1 }
   0xe   : > { %p746_p9 = por %p121_p6, %p47_p1  ;;  %p466_p12 = scmp.ge.s32.totalorder %s670_s17, 2 }
   0xf   : > { %s751_s26 = scalar_select %p38_p7, %s658_s14, %s40_s21  }
  0x10   : > { %p753_p11 = por %p127_p10, %p53_p3  ;;  %p492_p13 = scmp.lt.s32.totalorder %s670_s17, 2 }
  0x11   : > { %s153_s28 = sand.u32 1, %s658_s14   ;;  %s478_s30 = sshll.u32 %s666_s16, 3 }
  0x12   : > { %s467_s29 = sshll.u32 %s153_s28, 3  ;;  %s164_s6 = scalar_lea.hbm %s837_s0, %s478_s30 }
  0x13   : > { %s157_s7 = scalar_lea.vmem [#allocation2], %s467_s29  ;;  %s166_s9 = sshll.u32 %s164_s6, 4  ;;  %s167_s9 = int_to_ptr.hbm [resolvable:$true] %s166_s9 }
  0x14   : > { %s168_s8 = sshll.u32 %s157_s7, 4  ;;  %p485_p0 = pnand %p492_p13, %p736_p4  ;;  %s169_s8 = int_to_ptr.vmem [resolvable:$true] %s168_s8 }
  0x15   : > { %p470_p1 = scmp.ge.s32.totalorder %s670_s17, 1  ;;  %p173_p2 = scmp.lt.s32.totalorder %s670_s17, 3 }
  0x16   : > { %s154_s10 = scalar_lea.sflag [#allocation3], %s153_s28 }
  0x17   : > { %487 = dma.hbm_to_vmem [thread:$0]  (!%p485_p0), %s167_s9, 128, %s169_s8, %s154_s10  }
  0x18   : > { %p174_p3 = pnand %p470_p1, %p173_p2 }
  0x19   : > { %s769_s11 = sand.u32 (!%p174_p3), 1, %s654_s13  }
  0x1a   : > { %177 = sbr.rel (%p174_p3) target bundleno = 165 (0xa5), region = 32  ;;  %s471_s18 = sshll.u32 (!%p174_p3), %s769_s11, 3 }
  0x1b   : > { %s180_s19 = scalar_lea.sflag (!%p174_p3), [#allocation3], %s769_s11  ;;  %s183_s21 = scalar_lea.vmem (!%p174_p3), [#allocation2], %s471_s18 }
  0x1f   : > { %641 = dma.done.wait (%p742_p8), %s180_s19, 128  }
  0x20   : > { %643 = vsyncadd (%p742_p8), %s180_s19, 4294967168  ;;  %v672_v0 = vmov 0   ;;  %v673_v1 = vmov 4.0   ;;  %v209_v3 = vld [vmem:[%s183_s21] sm:$0xff]  ;;  %v210_v4 = vld [vmem:[%s838_s1] sm:$0xf] }
  0x21   : > { %545 = vset.pattern.permute.xlu0 %v672_v0  ;;  %546 = vrcp.f32 %v673_v1  ;;  %213 = vst [vmem:[#allocation1] ss:$2 sm:$0xff] %v209_v3  ;;  %v211_v6 = vld [vmem:[%s839_s2] sm:$0xf]  ;;  %vm218_vm0 = vcmask 1043456   ;;  %v674_v32 = vmov 3.0  }
  0x22   : > { %334 = vperm.xlu0 %545, %v210_v4   ;;  %548 = vrcp.f32 %v674_v32  ;;  %s479_s24 = sshll.u32 %s662_s15, 3  ;;  %s206_s6 = scalar_lea.vmem [#allocation5], %s471_s18 }
  0x23   : > { %s374_s5 = scalar_lea.hbm %s840_s3, %s479_s24  ;;  %s376_s7 = sshll.u32 %s206_s6, 4  ;;  %s377_s7 = int_to_ptr.vmem [resolvable:$true] %s376_s7 }
  0x24   : > { %s378_s8 = sshll.u32 %s374_s5, 4  ;;  %s361_s15 = scalar_lea.sflag [#allocation4], %s769_s11  ;;  %s379_s8 = int_to_ptr.hbm [resolvable:$true] %s378_s8 }
  0x25   : > { %s602_s9 = sshra.s32 %s379_s8, 4  ;;  %s608_s18 = scalar_lea.hbm %s840_s3, 16  ;;  %s603_s9 = int_to_ptr.hbm [resolvable:$true] %s602_s9 }
  0x26   : > { %s604_s10 = scalar_lea.hbm %s603_s9, 8  ;;  %p609_p7 = scmp.lt.s32.totalorder %s603_s9, %s840_s3 }
  0x27   : > { %v547_v2 = vpop.eup %546  ;;  %p605_p4 = scmp.ne.s32.totalorder %s603_s9, %s604_s10  ;;  %p610_p8 = scmp.lt.s32.totalorder %s608_s18, %s604_s10 }
  0x28   : > { %v234_v5 = vmul.f32 4.0, %v547_v2  ;;  %v214_v8 = vld.sshfl [vmem:[#allocation1] sm:$0xff pattern:$0x75316420]  ;;  %vm238_vm1 = vweird.f32 %v547_v2  ;;  %v549_v34 = vpop.eup %548 }
  0x29   : > { %v215_v9 = vld.sshfl [vmem:[#allocation1 + $0x8] sm:$0xff pattern:$0x75316420]  ;;  %v219_v10 = vsel %vm218_vm0, %v214_v8, 0.0  ;;  %v270_v35 = vmul.f32 3.0, %v549_v34  ;;  %vm274_vm2 = vweird.f32 %v549_v34  ;;  %p606_p5 = pnand %p605_p4, %p746_p9  ;;  %p611_p10 = por %p610_p8, %p609_p7 }
  0x2a   : > { %v235_v7 = vsub.f32 1.0, %v234_v5  ;;  %349 = vperm.xlu0 %545, %v211_v6   ;;  %v226_v11 = vsel %vm218_vm0, %v215_v9, 0.0  ;;  %v220_v12 = vrot.slane %v219_v10, 4 }
  0x2b   : > { %v227_v13 = vrot.slane %v226_v11, 4  ;;  %v271_v36 = vsub.f32 1.0, %v270_v35  ;;  %p607_p6 = pneg %p606_p5 }
  0x2c   : > { %v236_v14 = vmul.f32 %v547_v2, %v235_v7  ;;  %v221_v15 = vadd.f32 %v220_v12, %v219_v10 }
  0x2d   : > { %v228_v16 = vadd.f32 %v227_v13, %v226_v11  ;;  %v272_v43 = vmul.f32 %v549_v34, %v271_v36  ;;  %p612_p13 = pnand %p611_p10, %p607_p6 }
  0x2e   : > { %v222_v17 = vrot.slane %v221_v15, 2  ;;  %v237_v19 = vadd.f32 %v547_v2, %v236_v14 }
  0x2f   : > { %v229_v18 = vrot.slane %v228_v16, 2  ;;  %v273_v48 = vadd.f32 %v549_v34, %v272_v43 }
  0x30   : > { %v223_v20 = vadd.f32 %v222_v17, %v221_v15  ;;  %v239_v24 = vsel %vm238_vm1, %v547_v2, %v237_v19 }
  0x31   : > { %v230_v21 = vadd.f32 %v229_v18, %v228_v16  ;;  %v275_v53 = vsel %vm274_vm2, %v549_v34, %v273_v48 }
  0x32   : > { %v224_v22 = vrot.slane %v223_v20, 1 }
  0x33   : > { %v231_v23 = vrot.slane %v230_v21, 1 }
  0x34   : > { %v225_v25 = vadd.f32 %v224_v22, %v223_v20 }
  0x35   : > { %v232_v26 = vadd.f32 %v231_v23, %v230_v21 }
  0x36   : > { %v240_v27 = vmul.f32 %v239_v24, %v225_v25 }
  0x37   : > { %v241_v28 = vmul.f32 %v239_v24, %v232_v26 }
  0x39   : > { %v244_v29 = vrot.slane %v241_v28, 4 }
  0x3b   : > { %v245_v30 = vsel %vm218_vm0, %v240_v27, %v244_v29 }
  0x3c   : > { %v247_v31 = vsub.f32 %v209_v3, %v245_v30 }
  0x3e   : > { %v248_v33 = vmul.f32 %v247_v31, %v247_v31 }
  0x40   : > { %250 = vst [vmem:[#allocation1] ss:$2 sm:$0xff] %v248_v33 }
  0x47   : > { %v251_v37 = vld.sshfl [vmem:[#allocation1] sm:$0xff pattern:$0x75316420]  ;;  %v252_v38 = vld.sshfl [vmem:[#allocation1 + $0x8] sm:$0xff pattern:$0x75316420] }
  0x48   : > { %v255_v39 = vsel %vm218_vm0, %v251_v37, 0.0  ;;  %v262_v40 = vsel %vm218_vm0, %v252_v38, 0.0  ;;  %338 = vst [vmem:[#allocation1] ss:$2 sm:$0xff] %v247_v31 }
  0x49   : > { %v256_v41 = vrot.slane %v255_v39, 4  ;;  %v263_v42 = vrot.slane %v262_v40, 4 }
  0x4b   : > { %v257_v44 = vadd.f32 %v256_v41, %v255_v39  ;;  %v264_v45 = vadd.f32 %v263_v42, %v262_v40 }
  0x4d   : > { %v258_v46 = vrot.slane %v257_v44, 2  ;;  %v265_v47 = vrot.slane %v264_v45, 2 }
  0x4f   : > { %v259_v49 = vadd.f32 %v258_v46, %v257_v44  ;;  %v266_v50 = vadd.f32 %v265_v47, %v264_v45  ;;  %v340_v32 = vld.sshfl [vmem:[#allocation1 + $0x8] sm:$0xff pattern:$0x75316420]  ;;  %v339_v35 = vld.sshfl [vmem:[#allocation1] sm:$0xff pattern:$0x75316420] }
  0x51   : > { %v260_v51 = vrot.slane %v259_v49, 1  ;;  %v267_v52 = vrot.slane %v266_v50, 1 }
  0x53   : > { %v261_v54 = vadd.f32 %v260_v51, %v259_v49  ;;  %v268_v55 = vadd.f32 %v267_v52, %v266_v50 }
  0x55   : > { %v276_v56 = vmul.f32 %v275_v53, %v261_v54  ;;  %v277_v57 = vmul.f32 %v275_v53, %v268_v55 }
  0x57   : > { %550 = vrsqrt.f32 %v276_v56  ;;  %vm297_vm3 = vcmp.eq.f32.partialorder %v277_v57, inf  ;;  %vm285_vm4 = vcmp.eq.f32.partialorder %v276_v56, inf  ;;  %v300_v8 = vand.u32 2147483648, %v277_v57 }
  0x58   : > { %552 = vrsqrt.f32 %v277_v57  ;;  %vm299_vm5 = vcmp.eq.f32.partialorder %v277_v57, 0.0  ;;  %v288_v10 = vand.u32 2147483648, %v276_v56  ;;  %vm287_vm6 = vcmp.eq.f32.partialorder %v276_v56, 0.0 }
  0x5d   : > { %v551_v58 = vpop.eup %550 }
  0x5e   : > { %v553_v59 = vpop.eup %552  ;;  %v279_v60 = vmul.f32 %v551_v58, %v276_v56 }
  0x5f   : > { %v291_v61 = vmul.f32 %v553_v59, %v277_v57 }
  0x60   : > { %v280_v62 = vmul.f32 %v551_v58, %v279_v60 }
  0x61   : > { %v292_v63 = vmul.f32 %v553_v59, %v291_v61 }
  0x62   : > { %v281_v1 = vmul.f32 0.5, %v280_v62 }
  0x63   : > { %v293_v0 = vmul.f32 0.5, %v292_v63 }
  0x64   : > { %v282_v3 = vsub.f32 1.5, %v281_v1 }
  0x65   : > { %v294_v2 = vsub.f32 1.5, %v293_v0 }
  0x66   : > { %v283_v5 = vmul.f32 %v551_v58, %v282_v3 }
  0x67   : > { %v295_v4 = vmul.f32 %v553_v59, %v294_v2 }
  0x68   : > { %v284_v7 = vmul.f32 %v283_v5, %v276_v56 }
  0x69   : > { %v296_v6 = vmul.f32 %v295_v4, %v277_v57 }
  0x6a   : > { %v286_v11 = vsel %vm285_vm4, %v276_v56, %v284_v7 }
  0x6b   : > { %v298_v9 = vsel %vm297_vm3, %v277_v57, %v296_v6  ;;  %v289_v13 = vsel %vm287_vm6, %v288_v10, %v286_v11 }
  0x6c   : > { %v301_v12 = vsel %vm299_vm5, %v300_v8, %v298_v9  ;;  %v302_v15 = vadd.f32 1e-06, %v289_v13 }
  0x6d   : > { %v303_v14 = vadd.f32 1e-06, %v301_v12 }
  0x6e   : > { %vm309_vm9 = vweird.f32 %v302_v15  ;;  %v315_v27 = vand.u32 2147483648, %v302_v15  ;;  %v313_v30 = vand.u32 2147483647, %v302_v15 }
  0x6f   : > { %554 = vrcp.f32 %v303_v14  ;;  %vm323_vm7 = vweird.f32 %v303_v14  ;;  %v329_v24 = vand.u32 2147483648, %v303_v14  ;;  %v327_v26 = vand.u32 2147483647, %v303_v14 }
  0x70   : > { %556 = vrcp.f32 %v302_v15  ;;  %v316_v36 = vor.u32 1.1754944e-38, %v315_v27  ;;  %vm314_vm14 = vcmp.eq.f32.partialorder %v313_v30, 8.507059e+37 }
  0x71   : > { %v330_v33 = vor.u32 1.1754944e-38, %v329_v24  ;;  %vm328_vm13 = vcmp.eq.f32.partialorder %v327_v26, 8.507059e+37 }
  0x75   : > { %v555_v16 = vpop.eup %554 }
  0x76   : > { %v557_v17 = vpop.eup %556  ;;  %v319_v18 = vmul.f32 %v555_v16, %v303_v14  ;;  %vm324_vm8 = vweird.f32 %v555_v16 }
  0x77   : > { %v305_v19 = vmul.f32 %v557_v17, %v302_v15  ;;  %vm310_vm10 = vweird.f32 %v557_v17  ;;  %vm790_vm11 = vmor %vm323_vm7, %vm324_vm8 }
  0x78   : > { %v320_v20 = vsub.f32 1.0, %v319_v18  ;;  %vm311_vm12 = vmor %vm309_vm9, %vm310_vm10 }
  0x79   : > { %v306_v21 = vsub.f32 1.0, %v305_v19 }
  0x7a   : > { %v321_v22 = vmul.f32 %v555_v16, %v320_v20 }
  0x7b   : > { %v307_v23 = vmul.f32 %v557_v17, %v306_v21 }
  0x7c   : > { %v322_v25 = vadd.f32 %v555_v16, %v321_v22 }
  0x7d   : > { %v308_v29 = vadd.f32 %v557_v17, %v307_v23 }
  0x7e   : > { %v326_v34 = vsel %vm790_vm11, %v555_v16, %v322_v25 }
  0x7f   : > { %v312_v38 = vsel %vm311_vm12, %v557_v17, %v308_v29  ;;  %v331_v39 = vsel %vm328_vm13, %v330_v33, %v326_v34 }
  0x80   : > { %v317_v41 = vsel %vm314_vm14, %v316_v36, %v312_v38 }
  0x94   : > { %v335_v31 = vpop.permute.xlu0 %334 }
  0x95   : > { %v344_v37 = vmul.f32 %v340_v32, %v335_v31  ;;  %v343_v40 = vmul.f32 %v339_v35, %v335_v31 }
  0x97   : > { %v346_v42 = vmul.f32 %v344_v37, %v331_v39  ;;  %v345_v44 = vmul.f32 %v343_v40, %v317_v41 }
  0x9c   : > { %v350_v43 = vpop.permute.xlu0 %349 }
  0x9d   : > { %v353_v45 = vadd.f32 %v350_v43, %v346_v42  ;;  %v352_v46 = vadd.f32 %v350_v43, %v345_v44 }
  0x9f   : > { %v356_v47 = vrot.slane %v353_v45, 4 }
  0xa1   : > { %v357_v48 = vsel %vm218_vm0, %v352_v46, %v356_v47 }
  0xa2   : > { %359 = vst [vmem:[%s206_s6] sm:$0xff] %v357_v48 }
  0xa3   : > { %615 = shalt.err (!%p612_p13)
}
  0xa4   : > { %482 = dma.vmem_to_hbm [thread:$0]  (%p746_p9), %s377_s7, 128, %s379_s8, %s361_s15  }
  0xa5 PF: > { %s390_s11 = sand.u32 1, %s650_s12   ;;  %p489_p0 = pnand %p466_p12, %p753_p11 }
  0xa6   : > { %s391_s28 = scalar_lea.sflag [#allocation4], %s390_s11 }
  0xa7   : > { %p490_p1 = pneg %p489_p0 }
  0xa9   : > { %645 = dma.done.wait (%p490_p1), %s391_s28, 128  }
  0xaa   : > { %647 = vsyncadd (%p490_p1), %s391_s28, 4294967168  ;;  %s19_s17 = sadd.s32 1, %s670_s17   ;;  %s847_s12 = smov %s654_s13 }
  0xab   : > { %p16_p2 = scmp.ge.s32.totalorder %s19_s17, 4   ;;  %s848_s13 = smov %s658_s14 }
  0xac   : > { %s849_s14 = smov %s751_s26  ;;  %s850_s15 = smov %s666_s16 }
  0xad   : > { %s851_s16 = smov %s853_s20  ;;  %18 = sbr.rel (!%p16_p2) target bundleno = 6 (0x6), region = 77 }
  0xb2   :  { %397 = vsyncpa [#allocation3], 1 }
  0xb3   :  { %399 = vsyncpa [#allocation3 + $0x1], 1 }
  0xb4   :  { %400 = vsyncpa [#allocation4], 1 }
  0xb5   :  { %402 = vsyncpa [#allocation4 + $0x1], 1 }

</bundles_post_ra>
